<compile_context>
chip_gen: v7x
topology: tpu7x:2x2x1
jax: 0.10.0
libtpu: 0.0.40
codegen_flags: <defaults>
</compile_context>

<pallas_src>
import functools

import jax
import jax.numpy as jnp
from jax.experimental import pallas as pl
from jax.experimental.pallas import tpu as pltpu

IN_F = 28 * 28      # 784
HID = 49
OUT = 10
H_PAD = 128         # hidden width zero-padded to one full lane tile


def fc3_kernel(x_ref, w1_ref, b1_ref, w2_ref, b2_ref, out_ref):
    # x_ref : (TB, 784) f32      w1_ref: (784, 128) bf16   b1_ref: (1, 128) f32
    # w2_ref: (128, 10) bf16     b2_ref: (1, 10)    f32    out_ref: (TB, 10) f32
    x = x_ref[...].astype(jnp.bfloat16)              # in-kernel cast (free VPU work)

    # fc1 + ReLU (bf16 MXU, f32 accumulate; padded hidden cols stay exactly 0)
    h = jnp.dot(x, w1_ref[...], preferred_element_type=jnp.float32)
    h = jnp.maximum(h + b1_ref[...], 0.0)

    # fc2: logits are only 10 wide -> nothing to mask, output store is tiny
    logits = jnp.dot(h.astype(jnp.bfloat16), w2_ref[...],
                     preferred_element_type=jnp.float32)
    logits = logits + b2_ref[...]

    # numerically stable softmax over dim=1, all f32 (v5e has no bf16 VPU/EUP)
    m = jnp.max(logits, axis=1, keepdims=True)
    e = jnp.exp(logits - m)
    denom = jnp.sum(e, axis=1, keepdims=True)
    out_ref[...] = (e * pl.reciprocal(denom, approx=False)).astype(out_ref.dtype)


def _cdiv(a, b):
    return (a + b - 1) // b


def _round_up(a, m):
    return _cdiv(a, m) * m


def _choose_tb(B, tb_max):
    """Pick a batch tile without ever padding x.

    - Small B: single block whose leading dim equals B (legal: block dim ==
      full array dim), grid=(1,).
    - Mid B (<= tb_max): split into >=2 tiles so both v7x TensorCores get
      work under dimension_semantics=("parallel",).
    - Large B: tb_max-sized tiles; the ragged tail block is handled by Pallas
      (OOB reads are row-local garbage in discarded rows, OOB writes dropped).
    """
    if B <= 512:
        return B
    if B <= tb_max:
        return min(_round_up(_cdiv(B, 2), 256), tb_max)
    return tb_max


def pad_params(w1, b1, w2, b2):
    """One-time weight padding/casting (hoisted out of the per-call path).

    Hidden dim is zero-padded to 128 so both MXU matmuls are lane-dense; the
    zero hidden columns stay exactly zero through ReLU and hit zero rows of
    w2p, so the math is exact for the 49 real hidden units. Logits stay
    10-wide, so there is no padded-column masking anywhere.
    """
    w1p = jnp.zeros((IN_F, H_PAD), jnp.bfloat16).at[:, :HID].set(w1.astype(jnp.bfloat16))
    b1p = jnp.zeros((1, H_PAD), jnp.float32).at[:, :HID].set(b1.astype(jnp.float32))
    w2p = jnp.zeros((H_PAD, OUT), jnp.bfloat16).at[:HID, :].set(w2.astype(jnp.bfloat16))
    b2p = b2.astype(jnp.float32).reshape(1, OUT)
    return w1p, b1p, w2p, b2p


@functools.partial(jax.jit, static_argnames=("tb_max",))
def fc3_forward(x_nchw, w1p, b1p, w2p, b2p, *, tb_max=2048):
    """x_nchw: (B, 1, 28, 28) float32. Returns (B, 10) softmax probabilities."""
    B = x_nchw.shape[0]
    x_flat = x_nchw.reshape(B, IN_F)                      # nn.Flatten()

    TB = _choose_tb(B, tb_max)
    grid = (_cdiv(B, TB),)

    # VMEM @ TB=2048: 2 double-buffered f32 x tiles = ~12.5 MiB + ~0.4 MiB of
    # weights + ~0.2 MiB of output -> well inside the 32 MiB default scoped
    # limit on v5e/v6e/v7x; no vmem_limit_bytes override needed.
    return pl.pallas_call(
        fc3_kernel,
        out_shape=jax.ShapeDtypeStruct((B, OUT), jnp.float32),
        grid=grid,
        in_specs=[
            pl.BlockSpec((TB, IN_F), lambda i: (i, 0)),     # tiled, auto-pipelined
            pl.BlockSpec((IN_F, H_PAD), lambda i: (0, 0)),  # resident weights
            pl.BlockSpec((1, H_PAD), lambda i: (0, 0)),
            pl.BlockSpec((H_PAD, OUT), lambda i: (0, 0)),
            pl.BlockSpec((1, OUT), lambda i: (0, 0)),
        ],
        out_specs=pl.BlockSpec((TB, OUT), lambda i: (i, 0)),
        compiler_params=pltpu.CompilerParams(
            dimension_semantics=("parallel",)),             # both TCs on v7x
    )(x_flat, w1p, b1p, w2p, b2p)


def init_params(key):
    """Deterministic init mimicking PyTorch nn.Linear (uniform ±1/sqrt(fan_in)).

    Weights are stored as (in_features, out_features), i.e. PyTorch W^T.
    """
    k1, k2, k3, k4 = jax.random.split(key, 4)
    bound1 = 1.0 / IN_F ** 0.5
    bound2 = 1.0 / HID ** 0.5
    w1 = jax.random.uniform(k1, (IN_F, HID), jnp.float32, -bound1, bound1)
    b1 = jax.random.uniform(k2, (HID,), jnp.float32, -bound1, bound1)
    w2 = jax.random.uniform(k3, (HID, OUT), jnp.float32, -bound2, bound2)
    b2 = jax.random.uniform(k4, (OUT,), jnp.float32, -bound2, bound2)
    return w1, b1, w2, b2


if __name__ == "__main__":
    key = jax.random.PRNGKey(0)
    k_x, k_p = jax.random.split(key)

    # Small batch, MNIST-like input implied by fc1 = Linear(28*28, 49).
    B = 2
    x = jax.random.normal(k_x, (B, 1, 28, 28), dtype=jnp.float32)
    w1, b1, w2, b2 = init_params(k_p)
    w1p, b1p, w2p, b2p = pad_params(w1, b1, w2, b2)       # hoisted, one-time

    out = jax.block_until_ready(fc3_forward(x, w1p, b1p, w2p, b2p))

    # Sanity check against pure-JAX f32 reference (bf16 matmuls -> loosened tol).
    ref_h = jnp.maximum(x.reshape(B, -1) @ w1 + b1, 0.0)
    ref = jax.nn.softmax(ref_h @ w2 + b2, axis=1)
    assert out.shape == (B, 10)
    assert jnp.allclose(out, ref, atol=2e-2), "mismatch vs reference"

    print("KERNEL_OK")
</pallas_src>

<mosaic_0001>
module attributes {stable_mosaic.version = 11 : i64} {
  func.func @fc3_kernel(%arg0: i32, %arg1: memref<2x784xf32, #tpu.memory_space<vmem>>, %arg2: memref<784x128xbf16, #tpu.memory_space<vmem>>, %arg3: memref<1x128xf32, #tpu.memory_space<vmem>>, %arg4: memref<128x10xbf16, #tpu.memory_space<vmem>>, %arg5: memref<1x10xf32, #tpu.memory_space<vmem>>, %arg6: memref<2x10xf32, #tpu.memory_space<vmem>>) attributes {dimension_semantics = [#tpu.dimension_semantics<parallel>], iteration_bounds = array<i64: 1>, scalar_prefetch = 0 : i64, scratch_operands = 0 : i64, tpu.core_type = #tpu.core_type<tc>, window_params = [{transform_indices = @transform_0, window_bounds = array<i64: 2, 784>}, {pipeline_mode = #tpu.pipeline_mode<synchronous>, transform_indices = @transform_1, window_bounds = array<i64: 784, 128>}, {pipeline_mode = #tpu.pipeline_mode<synchronous>, transform_indices = @transform_2, window_bounds = array<i64: 1, 128>}, {pipeline_mode = #tpu.pipeline_mode<synchronous>, transform_indices = @transform_3, window_bounds = array<i64: 128, 10>}, {pipeline_mode = #tpu.pipeline_mode<synchronous>, transform_indices = @transform_4, window_bounds = array<i64: 1, 10>}, {transform_indices = @transform_5, window_bounds = array<i64: 2, 10>}]} {
    %c0 = arith.constant 0 : index
    %c0_0 = arith.constant 0 : index
    %0 = vector.load %arg1[%c0, %c0_0] : memref<2x784xf32, #tpu.memory_space<vmem>>, vector<2x784xf32>
    %1 = arith.truncf %0 : vector<2x784xf32> to vector<2x784xbf16>
    %c0_1 = arith.constant 0 : index
    %c0_2 = arith.constant 0 : index
    %2 = vector.load %arg2[%c0_1, %c0_2] : memref<784x128xbf16, #tpu.memory_space<vmem>>, vector<784x128xbf16>
    %cst = arith.constant dense<0.000000e+00> : vector<2x128xf32>
    %3 = tpu.matmul %1, %2, %cst {dimension_numbers = #tpu.dot_dimension_numbers<[1], [0], [0], [1], [0, 0, 1, 1], [], []>} : vector<2x784xbf16>, vector<784x128xbf16>, vector<2x128xf32> -> vector<2x128xf32>
    %c0_3 = arith.constant 0 : index
    %c0_4 = arith.constant 0 : index
    %4 = vector.load %arg3[%c0_3, %c0_4] : memref<1x128xf32, #tpu.memory_space<vmem>>, vector<1x128xf32>
    %5 = vector.broadcast %4 : vector<1x128xf32> to vector<2x128xf32>
    %6 = arith.addf %3, %5 : vector<2x128xf32>
    %cst_5 = arith.constant 0.000000e+00 : f32
    %7 = vector.broadcast %cst_5 : f32 to vector<2x128xf32>
    %8 = arith.maximumf %6, %7 : vector<2x128xf32>
    %9 = arith.truncf %8 : vector<2x128xf32> to vector<2x128xbf16>
    %c0_6 = arith.constant 0 : index
    %c0_7 = arith.constant 0 : index
    %10 = vector.load %arg4[%c0_6, %c0_7] : memref<128x10xbf16, #tpu.memory_space<vmem>>, vector<128x10xbf16>
    %cst_8 = arith.constant dense<0.000000e+00> : vector<2x10xf32>
    %11 = tpu.matmul %9, %10, %cst_8 {dimension_numbers = #tpu.dot_dimension_numbers<[1], [0], [0], [1], [0, 0, 1, 1], [], []>} : vector<2x128xbf16>, vector<128x10xbf16>, vector<2x10xf32> -> vector<2x10xf32>
    %c0_9 = arith.constant 0 : index
    %c0_10 = arith.constant 0 : index
    %12 = vector.load %arg5[%c0_9, %c0_10] : memref<1x10xf32, #tpu.memory_space<vmem>>, vector<1x10xf32>
    %13 = vector.broadcast %12 : vector<1x10xf32> to vector<2x10xf32>
    %14 = arith.addf %11, %13 : vector<2x10xf32>
    %cst_11 = arith.constant dense<0xFF800000> : vector<2xf32>
    %15 = vector.multi_reduction <maximumf>, %14, %cst_11 [1] : vector<2x10xf32> to vector<2xf32>
    %16 = vector.shape_cast %15 : vector<2xf32> to vector<2x1xf32>
    %17 = vector.broadcast %16 : vector<2x1xf32> to vector<2x10xf32>
    %18 = arith.subf %14, %17 : vector<2x10xf32>
    %19 = math.exp %18 : vector<2x10xf32>
    %cst_12 = arith.constant dense<0.000000e+00> : vector<2xf32>
    %20 = vector.multi_reduction <add>, %19, %cst_12 [1] : vector<2x10xf32> to vector<2xf32>
    %21 = vector.shape_cast %20 : vector<2xf32> to vector<2x1xf32>
    %22 = tpu.reciprocal %21 : vector<2x1xf32> -> vector<2x1xf32>
    %23 = vector.broadcast %22 : vector<2x1xf32> to vector<2x10xf32>
    %24 = arith.mulf %19, %23 : vector<2x10xf32>
    %c0_13 = arith.constant 0 : index
    %c0_14 = arith.constant 0 : index
    %25 = vector.load %arg6[%c0_13, %c0_14] : memref<2x10xf32, #tpu.memory_space<vmem>>, vector<2x10xf32>
    tpu.vector_store %arg6[%c0_13, %c0_14], %24 {strides = array<i32>} : memref<2x10xf32, #tpu.memory_space<vmem>>, vector<2x10xf32>,
    return
  }
  func.func @transform_0(%arg0: i32) -> (i32, i32) {
    %c0_i32 = arith.constant 0 : i32
    %c0_i32_0 = arith.constant 0 : i32
    return %arg0, %c0_i32 : i32, i32
  }
  func.func @transform_1(%arg0: i32) -> (i32, i32) {
    %c0_i32 = arith.constant 0 : i32
    %c0_i32_0 = arith.constant 0 : i32
    %c0_i32_1 = arith.constant 0 : i32
    return %c0_i32, %c0_i32_0 : i32, i32
  }
  func.func @transform_2(%arg0: i32) -> (i32, i32) {
    %c0_i32 = arith.constant 0 : i32
    %c0_i32_0 = arith.constant 0 : i32
    %c0_i32_1 = arith.constant 0 : i32
    return %c0_i32, %c0_i32_0 : i32, i32
  }
  func.func @transform_3(%arg0: i32) -> (i32, i32) {
    %c0_i32 = arith.constant 0 : i32
    %c0_i32_0 = arith.constant 0 : i32
    %c0_i32_1 = arith.constant 0 : i32
    return %c0_i32, %c0_i32_0 : i32, i32
  }
  func.func @transform_4(%arg0: i32) -> (i32, i32) {
    %c0_i32 = arith.constant 0 : i32
    %c0_i32_0 = arith.constant 0 : i32
    %c0_i32_1 = arith.constant 0 : i32
    return %c0_i32, %c0_i32_0 : i32, i32
  }
  func.func @transform_5(%arg0: i32) -> (i32, i32) {
    %c0_i32 = arith.constant 0 : i32
    %c0_i32_0 = arith.constant 0 : i32
    return %arg0, %c0_i32 : i32, i32
  }
}

</mosaic_0001>

<bundles_post_ra>
// kernel: fc3_forward.1
= control target key start
LH: loop header
LB: loop body
LE: loop exit
PB: predicated region body
PF: predicated region fallthrough
CT: control target
= control target key end

     0   :  { %10 = vsyncpa [#allocation3], 0  ;;  %s1186_s0 = inlined_call_operand.vmem [shape: f32[2,784], index: 0, kind: input, shape index: {}]   ;;  %s1187_s1 = inlined_call_operand.hbm [shape: bf16[784,128], index: 1, kind: input, shape index: {}]   ;;  %s1188_s2 = inlined_call_operand.vmem [shape: f32[1,128], index: 2, kind: input, shape index: {}]   ;;  %s1189_s3 = inlined_call_operand.vmem [shape: bf16[128,10], index: 3, kind: input, shape index: {}]   ;;  %s1190_s4 = inlined_call_operand.vmem [shape: f32[1,10], index: 4, kind: input, shape index: {}]   ;;  %s1191_s5 = inlined_call_operand.hbm [shape: f32[2,10], index: 5, kind: output, shape index: {}]  }
   0x1   :  { %11 = vsyncpa [#allocation4], 0  ;;  %s1072_s18 = smov [#allocation2]   ;;  %s1024_s22 = scalar_lea.hbm %s1187_s1, 6272 }
   0x2   :  { %s19_s19 = sshll.u32 %s1072_s18, 4  ;;  %p1025_p0 = scmp.ne.s32.totalorder %s1187_s1, %s1024_s22  ;;  %s20_s19 = int_to_ptr.vmem [resolvable:$true] %s19_s19 }
   0x3   :  { %p1028_p1 = scmp.lt.u32.totalorder %s1024_s22, %s1187_s1 }
   0x5   :  { %p1030_p2 = pnand %p1028_p1, %p1025_p0 }
   0x7   :  { %1033 = shalt.err (!%p1030_p2)
}
   0x8   :  { %s1034_s27 = scalar_lea.vmem %s20_s19, 6272  ;;  %p1039_p4 = scmp.lt.s32.totalorder %s20_s19, %s20_s19 }
   0x9   :  { %p1035_p3 = scmp.ne.s32.totalorder %s20_s19, %s1034_s27  ;;  %p1040_p5 = scmp.lt.s32.totalorder %s1034_s27, %s1034_s27 }
   0xb   :  { %p1041_p6 = por %p1040_p5, %p1039_p4 }
   0xd   :  { %p1042_p7 = pnand %p1041_p6, %p1035_p3 }
   0xf   :  { %1045 = shalt.err (!%p1042_p7)
}
  0x10   :  { %s1073_s28 = smov 64   ;;  %s1074_s29 = smov 4  }
  0x11   :  { %25 = dma.hbm_to_vmem [thread:$0]  %s1187_s1, 6272, %s20_s19, [#allocation3], %s1073_s28, %s1073_s28, %s1074_s29  }
  0x12   :  { %1068 = dma.done.wait [#allocation3], 6272  }
  0x13   :  { %1069 = vsyncadd [#allocation3], 4294961024  ;;  %v961_v0 = vld [vmem:[#allocation2 + $0x40] sm:$0xff]   ;;  %v965_v4 = vld [vmem:[#allocation2 + $0x48] sm:$0xff]   ;;  %v1075_v21 = vmov 1983009808   ;;  %v44_v23 = vlaneseq }
  0x14   :  { %v962_v1 = vld [vmem:[#allocation2] sm:$0xff]   ;;  %851 = vmatprep.subr.bf16.mxu0 %v961_v0  ;;  %v966_v5 = vld [vmem:[#allocation2 + $0x8] sm:$0xff]   ;;  %v969_v8 = vld [vmem:[#allocation2 + $0x50] sm:$0xff]   ;;  %v42_v22 = vunpack.c.l.s4 %v1075_v21  ;;  %v1076_v45 = vmov 0.0   ;;  %vm1077_vm0 = vmmov 0   ;;  %vm486_vm1 = vcmask 130048  }
  0x15   :  { %v963_v2 = vld [vmem:[#allocation2 + $0xc0] sm:$0xff]   ;;  %852 = vmatpush3.bf16.msra.mxu0 %v962_v1  ;;  %v967_v6 = vld [vmem:[#allocation2 + $0xc8] sm:$0xff]   ;;  %v970_v9 = vld [vmem:[#allocation2 + $0x10] sm:$0xff]   ;;  %v45_v29 = vshrl.u32 %v44_v23, 7  ;;  %vm763_vm2 = vcmask 74752  }
  0x16   :  { %v964_v3 = vld [vmem:[#allocation2 + $0x80] sm:$0xff]   ;;  %873 = vmatprep.subr.bf16.mxu1 %v963_v2  ;;  %853 = vmatprep.subr.bf16.mxu0 %v965_v4  ;;  %v968_v7 = vld [vmem:[#allocation2 + $0x88] sm:$0xff]   ;;  %v971_v10 = vld [vmem:[#allocation2 + $0xd0] sm:$0xff]   ;;  %v43_v28 = vunpack.c.0.s8 %v42_v22 }
  0x17   :  { %874 = vmatpush3.bf16.msra.mxu1 %v964_v3  ;;  %v972_v11 = vld [vmem:[#allocation2 + $0x90] sm:$0xff]   ;;  %v973_v12 = vld [vmem:[#allocation2 + $0x58] sm:$0xff]   ;;  %v977_v16 = vld [vmem:[#allocation2 + $0x60] sm:$0xff]  }
  0x18   :  { %875 = vmatprep.subr.bf16.mxu1 %v967_v6  ;;  %v974_v13 = vld [vmem:[#allocation2 + $0x18] sm:$0xff]   ;;  %v978_v17 = vld [vmem:[#allocation2 + $0x20] sm:$0xff]   ;;  %v981_v20 = vld [vmem:[#allocation2 + $0x68] sm:$0xff]   ;;  %v46_v34 = vsub.s32 %v43_v28, %v45_v29 }
  0x19   :  { %854 = vmatpush3.bf16.msra.mxu0 %v966_v5  ;;  %v975_v14 = vld [vmem:[#allocation2 + $0xd8] sm:$0xff]   ;;  %v979_v18 = vld [vmem:[#allocation2 + $0xe0] sm:$0xff]   ;;  %v982_v24 = vld [vmem:[#allocation2 + $0x28] sm:$0xff]  }
  0x1a   :  { %855 = vmatprep.subr.bf16.mxu0 %v969_v8  ;;  %v976_v15 = vld [vmem:[#allocation2 + $0x98] sm:$0xff]   ;;  %v980_v19 = vld [vmem:[#allocation2 + $0xa0] sm:$0xff]   ;;  %v983_v25 = vld [vmem:[#allocation2 + $0xe8] sm:$0xff]  }
  0x1b   :  { %876 = vmatpush3.bf16.msra.mxu1 %v968_v7  ;;  %v984_v26 = vld [vmem:[#allocation2 + $0xa8] sm:$0xff]   ;;  %v985_v27 = vld [vmem:[#allocation2 + $0x70] sm:$0xff]   ;;  %v989_v33 = vld [vmem:[#allocation2 + $0x78] sm:$0xff]  }
  0x1c   :  { %877 = vmatprep.subr.bf16.mxu1 %v971_v10  ;;  %v986_v30 = vld [vmem:[#allocation2 + $0x30] sm:$0xff]   ;;  %v990_v35 = vld [vmem:[#allocation2 + $0x38] sm:$0xff]   ;;  %v36_v37 = vld [vmem:[%s1186_s0] sm:$0xff] }
  0x1d   :  { %856 = vmatpush3.bf16.msra.mxu0 %v970_v9  ;;  %v987_v31 = vld [vmem:[#allocation2 + $0xf0] sm:$0xff]   ;;  %v991_v36 = vld [vmem:[#allocation2 + $0xf8] sm:$0xff]   ;;  %v47_v38 = vrot.slane %v36_v37, %v46_v34  ;;  %v40_v40 = vcombine.high %v36_v37, %v36_v37  ;;  %v993_v41 = vld [vmem:[#allocation2 + $0x140] sm:$0xff]  }
  0x1e   :  { %857 = vmatprep.subr.bf16.mxu0 %v973_v12  ;;  %v988_v32 = vld [vmem:[#allocation2 + $0xb0] sm:$0xff]   ;;  %v992_v39 = vld [vmem:[#allocation2 + $0xb8] sm:$0xff]   ;;  %v995_v48 = vld [vmem:[#allocation2 + $0x100] sm:$0xff]  }
  0x1f   :  { %878 = vmatpush3.bf16.msra.mxu1 %v972_v11  ;;  %v55_v42 = vcombine.high %v47_v38, %v47_v38  ;;  %v54_v43 = vrot.slane %v40_v40, %v46_v34  ;;  %v80_v44 = vpack.c.bf16 %v47_v38, %v47_v38  ;;  %v996_v50 = vld [vmem:[#allocation2 + $0x148] sm:$0xff]   ;;  %v998_v53 = vld [vmem:[#allocation2 + $0x150] sm:$0xff]   ;;  %v1000_v55 = vld [vmem:[#allocation2 + $0x158] sm:$0xff]  }
  0x20   :  { %879 = vmatprep.subr.bf16.mxu1 %v975_v14  ;;  %v997_v52 = vld [vmem:[#allocation2 + $0x108] sm:$0xff]   ;;  %v999_v54 = vld [vmem:[#allocation2 + $0x110] sm:$0xff]   ;;  %v1001_v56 = vld [vmem:[#allocation2 + $0x118] sm:$0xff]  }
  0x21   :  { %858 = vmatpush3.bf16.msra.mxu0 %v974_v13  ;;  %v81_v46 = vpack.c.bf16 %v55_v42, %v55_v42  ;;  %v56_v47 = vcombine.high %v54_v43, %v54_v43  ;;  %v82_v49 = vpack.c.bf16 %v54_v43, %v54_v43  ;;  %v1002_v57 = vld [vmem:[#allocation2 + $0x160] sm:$0xff]   ;;  %v37_v59 = vld [vmem:[%s1186_s0 + $0x8] sm:$0x3f]  ;;  %v1006_v5 = vld [vmem:[#allocation2 + $0x170] sm:$0xff]  }
  0x22   :  { %859 = vmatprep.subr.bf16.mxu0 %v977_v16  ;;  %v1010_v58 = vld [vmem:[#allocation2 + $0x180] sm:$0xff]   ;;  %v57_v61 = vcombine.high %v37_v59, %v37_v59  ;;  %v64_v62 = vrot.slane %v37_v59, %v46_v34  ;;  %v1004_v63 = vld [vmem:[#allocation2 + $0x168] sm:$0xff]   ;;  %v1007_v6 = vld [vmem:[#allocation2 + $0x130] sm:$0xff]  }
  0x23   :  { %880 = vmatpush3.bf16.msra.mxu1 %v976_v15  ;;  %522 = vmatprep.mubr.bf16.mxu0 %v81_v46  ;;  %v83_v51 = vpack.c.bf16 %v56_v47, %v56_v47  ;;  %v1003_v60 = vld [vmem:[#allocation2 + $0x120] sm:$0xff]   ;;  %v1005_v4 = vld [vmem:[#allocation2 + $0x128] sm:$0xff]   ;;  %v1008_v7 = vld [vmem:[#allocation2 + $0x178] sm:$0xff]  }
  0x24   :  { %881 = vmatprep.subr.bf16.mxu1 %v979_v18  ;;  %v71_v0 = vrot.slane %v57_v61, %v46_v34  ;;  %v72_v1 = vcombine.high %v64_v62, %v64_v62  ;;  %v1009_v8 = vld [vmem:[#allocation2 + $0x138] sm:$0xff]   ;;  %v84_v9 = vpack.c.bf16 %v64_v62, %v64_v62  ;;  %v1012_v10 = vld [vmem:[%s1189_s3] sm:$0xff]   ;;  %v1013_v11 = vld [vmem:[%s1189_s3 + $0x8] sm:$0xff]  }
  0x25   :  { %860 = vmatpush3.bf16.msra.mxu0 %v978_v17  ;;  %562 = vmatprep.mubr.bf16.mxu1 %v83_v51  ;;  %v1014_v12 = vld [vmem:[%s1189_s3 + $0x10] sm:$0xff]   ;;  %v1015_v13 = vld [vmem:[%s1189_s3 + $0x18] sm:$0xff]   ;;  %v1016_v14 = vld [vmem:[%s1189_s3 + $0x20] sm:$0xff]  }
  0x26   :  { %861 = vmatprep.subr.bf16.mxu0 %v981_v20  ;;  %v85_v2 = vpack.c.bf16 %v72_v1, %v72_v1  ;;  %v86_v3 = vpack.c.bf16 %v71_v0, %v71_v0  ;;  %v1017_v15 = vld [vmem:[%s1189_s3 + $0x28] sm:$0xff]   ;;  %v1018_v16 = vld [vmem:[%s1189_s3 + $0x30] sm:$0xff]   ;;  %v1019_v17 = vld [vmem:[%s1189_s3 + $0x38] sm:$0xff]  }
  0x27   :  { %882 = vmatpush3.bf16.msra.mxu1 %v980_v19  ;;  %v791_v19 = vld [vmem:[%s1188_s2] ss:$0 sm:$0xff] }
  0x28   :  { %883 = vmatprep.subr.bf16.mxu1 %v983_v25 }
  0x29   :  { %862 = vmatpush3.bf16.msra.mxu0 %v982_v24 }
  0x2a   :  { %863 = vmatprep.subr.bf16.mxu0 %v985_v27 }
  0x2b   :  { %884 = vmatpush3.bf16.msra.mxu1 %v984_v26 }
  0x2c   :  { %885 = vmatprep.subr.bf16.mxu1 %v987_v31 }
  0x2d   :  { %864 = vmatpush3.bf16.msra.mxu0 %v986_v30 }
  0x2e   :  { %865 = vmatprep.subr.bf16.mxu0 %v989_v33 }
  0x2f   :  { %886 = vmatpush3.bf16.msra.mxu1 %v988_v32 }
  0x30   :  { %887 = vmatprep.subr.bf16.mxu1 %v991_v36 }
  0x31   :  { %866 = vmatpush3.bf16.msra.mxu0 %v990_v35 }
  0x32   :  { %895 = vmatprep.subr.bf16.mxu0 %v993_v41 }
  0x33   :  { %888 = vmatpush3.bf16.msra.mxu1 %v992_v39 }
  0x34   :  { %928 = vmatprep.subr.bf16.mxu1 %v1076_v45  ;;  %523 = vmatmul.mubr.bf16.vlgmr.msra.gmra.mrb[0].mxu0 %v80_v44  ;;  %v842_v44 = vld [vmem:[%s1190_s4] ss:$0 sm:$0xff]  ;;  %s1078_s4 = smov [#allocation5]  }
  0x35   :  { %896 = vmatpush3.bf16.msra.mxu0 %v995_v48  ;;  %602 = vmatprep.mubr.bf16.mxu0 %v85_v2  ;;  %s782_s27 = sshll.u32 %s1078_s4, 4  ;;  %s783_s27 = int_to_ptr.vmem [resolvable:$true] %s782_s27 }
  0x36   :  { %563 = vmatmul.mubr.bf16.vlgmr.msra.gmra.mrb[0].mxu1 %v82_v49  ;;  %897 = vmatprep.subr.bf16.mxu0 %v996_v50  ;;  %s1046_s28 = scalar_lea.vmem %s783_s27, 32  ;;  %p1051_p9 = scmp.lt.s32.totalorder %s783_s27, %s783_s27 }
  0x37   :  { %930 = vmatprep.mubr.msk.bf16.mxu1 %vm1077_vm0, %v1076_v45  ;;  %929 = vmatpush3.bf16.msra.mxu1 %v1010_v58  ;;  %p1047_p8 = scmp.ne.s32.totalorder %s783_s27, %s1046_s28  ;;  %p1052_p10 = scmp.lt.s32.totalorder %s1046_s28, %s1046_s28 }
  0x38   :  { %934 = vmatprep.subr.bf16.mxu1 %v1076_v45 }
  0x39   :  { %898 = vmatpush3.bf16.msra.mxu0 %v997_v52  ;;  %p1053_p11 = por %p1052_p10, %p1051_p9 }
  0x3a   :  { %899 = vmatprep.subr.bf16.mxu0 %v998_v53 }
  0x3b   :  { %p1054_p12 = pnand %p1053_p11, %p1047_p8 }
  0x3d   :  { %900 = vmatpush3.bf16.msra.mxu0 %v999_v54 }
  0x3e   :  { %901 = vmatprep.subr.bf16.mxu0 %v1000_v55  ;;  %931 = vmatmul.mubr.msk.bf16.vlgmr.msra.gmra.mrb[4].mxu1 %vm486_vm1, %v86_v3 }
  0x3f   :  { %950 = vmatprep.mubr.msk.bf16.mxu1 %vm1077_vm0, %v1076_v45  ;;  %935 = vmatpush3.bf16.msra.mxu1 %v1012_v10 }
  0x40   :  { %936 = vmatprep.subr.bf16.mxu1 %v1076_v45 }
  0x41   :  { %902 = vmatpush3.bf16.msra.mxu0 %v1001_v56 }
  0x42   :  { %903 = vmatprep.subr.bf16.mxu0 %v1002_v57 }
  0x43   :  { %937 = vmatpush3.bf16.msra.mxu1 %v1013_v11 }
  0x44   :  { %938 = vmatprep.subr.bf16.mxu1 %v1076_v45 }
  0x45   :  { %904 = vmatpush3.bf16.msra.mxu0 %v1003_v60 }
  0x46   :  { %905 = vmatprep.subr.bf16.mxu0 %v1004_v63 }
  0x47   :  { %939 = vmatpush3.bf16.msra.mxu1 %v1014_v12 }
  0x48   :  { %940 = vmatprep.subr.bf16.mxu1 %v1076_v45 }
  0x49   :  { %906 = vmatpush3.bf16.msra.mxu0 %v1005_v4 }
  0x4a   :  { %907 = vmatprep.subr.bf16.mxu0 %v1006_v5 }
  0x4b   :  { %941 = vmatpush3.bf16.msra.mxu1 %v1015_v13 }
  0x4c   :  { %942 = vmatprep.subr.bf16.mxu1 %v1076_v45 }
  0x4d   :  { %908 = vmatpush3.bf16.msra.mxu0 %v1007_v6 }
  0x4e   :  { %909 = vmatprep.subr.bf16.mxu0 %v1008_v7 }
  0x4f   :  { %943 = vmatpush3.bf16.msra.mxu1 %v1016_v14 }
  0x50   :  { %944 = vmatprep.subr.bf16.mxu1 %v1076_v45 }
  0x51   :  { %910 = vmatpush3.bf16.msra.mxu0 %v1009_v8 }
  0x53   :  { %945 = vmatpush3.bf16.msra.mxu1 %v1017_v15 }
  0x54   :  { %603 = vmatmul.mubr.bf16.vlgmr.msra.gmra.mrb[4].mxu0 %v84_v9  ;;  %946 = vmatprep.subr.bf16.mxu1 %v1076_v45 }
  0x57   :  { %947 = vmatpush3.bf16.msra.mxu1 %v1018_v16 }
  0x58   :  { %948 = vmatprep.subr.bf16.mxu1 %v1076_v45 }
  0x5b   :  { %949 = vmatpush3.bf16.msra.mxu1 %v1019_v17 }
 0x107   :  { %v867_v18 = vpop.f32.mrb[0].mxu0 }
 0x108   :  { %v868_v20 = vpop.f32.mrb[1].mxu0 }
 0x109   :  { %v869_v21 = vadd.f32 %v868_v20, %v867_v18  ;;  %v870_v22 = vpop.f32.mrb[2].mxu0  ;;  %v889_v23 = vpop.f32.mrb[0].mxu1 }
 0x10a   :  { %v871_v24 = vpop.f32.mrb[3].mxu0  ;;  %v890_v25 = vpop.f32.mrb[1].mxu1 }
 0x10b   :  { %v525_v26 = vadd.f32 %v869_v21, %v791_v19  ;;  %v891_v27 = vadd.f32 %v890_v25, %v889_v23  ;;  %v892_v28 = vpop.f32.mrb[2].mxu1 }
 0x10c   :  { %v893_v29 = vpop.f32.mrb[3].mxu1 }
 0x10d   :  { %v565_v30 = vadd.f32 %v891_v27, %v525_v26 }
 0x111   :  { %v644_v31 = vpop.f32.mrb[4].mxu1 }
 0x112   :  { %v932_v32 = vpop.f32.mrb[5].mxu1 }
 0x113   :  { %v647_v33 = vpop.f32.mrb[6].mxu1 }
 0x114   :  { %v933_v34 = vpop.f32.mrb[7].mxu1 }
 0x127   :  { %v911_v35 = vpop.f32.mrb[4].mxu0 }
 0x128   :  { %v912_v36 = vpop.f32.mrb[5].mxu0 }
 0x129   :  { %v913_v37 = vadd.f32 %v912_v36, %v911_v35  ;;  %v914_v38 = vpop.f32.mrb[6].mxu0 }
 0x12a   :  { %v915_v39 = vpop.f32.mrb[7].mxu0 }
 0x12b   :  { %v605_v40 = vadd.f32 %v913_v37, %v565_v30 }
 0x12d   :  { %v645_v41 = vadd.f32 %v644_v31, %v605_v40 }
 0x12f   :  { %v650_v42 = vmax.f32 %v645_v41, 0.0 }
 0x131   :  { %v651_v43 = vpack.c.bf16 %v650_v42, %v650_v42 }
 0x133   :  { %951 = vmatmul.mubr.bf16.vlgmr.msra.gmra.mrb[8].mxu1 %v651_v43 }
 0x206   :  { %v757_v45 = vpop.f32.mrb[8].mxu1 }
 0x207   :  { %v758_v46 = vadd.f32 %v842_v44, %v757_v45  ;;  %v952_v47 = vpop.f32.mrb[9].mxu1 }
 0x208   :  { %v760_v48 = vpop.f32.mrb[10].mxu1 }
 0x209   :  { %v953_v49 = vpop.f32.mrb[11].mxu1  ;;  %v764_v50 = vsel %vm763_vm2, %v758_v46, -inf }
 0x20a   :  { %765 = vmax.xlane.f32.xlu0 %v764_v50 }
 0x297   :  { %v766_v51 = vpop.xlane.xlu0 %765 }
 0x298   :  { %v767_v52 = vsub.f32 %v758_v46, %v766_v51 }
 0x29a   :  { %v768_v53 = vmul.f32 1.442695, %v767_v52 }
 0x29c   :  { %1020 = vpow2.f32 %v768_v53 }
 0x2a6   :  { %v1021_v54 = vpop.eup %1020 }
 0x2a7   :  { %v770_v55 = vsel %vm763_vm2, %v1021_v54, 0.0 }
 0x2a8   :  { %771 = vadd.xlane.f32.xlu0 %v770_v55 }
 0x335   :  { %v772_v56 = vpop.xlane.xlu0 %771 }
 0x336   :  { %1022 = vrcp.f32 %v772_v56 }
 0x340   :  { %v1023_v57 = vpop.eup %1022 }
 0x341   :  { %v774_v58 = vmul.f32 %v1023_v57, %v1021_v54 }
 0x343   :  { %775 = vst.msk [vmem:[#allocation5] sm:$0x3] %vm763_vm2, %v774_v58 }
 0x344   :  { %1057 = shalt.err (!%p1054_p12)
}
 0x345   :  { %s1058_s6 = scalar_lea.hbm %s1191_s5, 32 }
 0x346   :  { %p1059_p13 = scmp.ne.s32.totalorder %s1191_s5, %s1058_s6  ;;  %p1062_p0 = scmp.lt.u32.totalorder %s1058_s6, %s1191_s5 }
 0x348   :  { %p1064_p1 = pnand %p1062_p0, %p1059_p13 }
 0x34a   :  { %1067 = shalt.err (!%p1064_p1)
}
 0x34b   :  { %785 = dma.vmem_to_hbm [thread:$0]  %s783_s27, 32, %s1191_s5, [#allocation4]  }
 0x34c   :  { %1070 = dma.done.wait [#allocation4], 32  }
 0x34d   :  { %1071 = vsyncadd [#allocation4], 4294967264 }
 0x34e   :  { %789 = vsyncpa [#allocation3], 1 }
 0x34f   :  { %790 = vsyncpa [#allocation4], 1 }

</bundles_post_ra>
